<compile_context>
chip_gen: v7x
topology: tpu7x:2x2x1
jax: 0.10.0
libtpu: 0.0.40
codegen_flags: <defaults>
</compile_context>

<pallas_src>
import functools
import math

import numpy as np
import jax
import jax.numpy as jnp
from jax.experimental import pallas as pl
from jax.experimental.pallas import tpu as pltpu


# ---------------------------------------------------------------------------
# Constant column-pairing operators.
#
# The wrapper views x (B, C, H, W) as (B, C*(H/2), 2W): row m = [even_row |
# odd_row] of one vertical pixel-pair (a free, contiguous reshape).  For the
# Haar wavelet (band_low = [r, r], band_high = [r, -r], r = 1/sqrt(2)):
#   LL[q]          = 0.5*(e[2q] + e[2q+1] + o[2q] + o[2q+1])
#   (LH+HL+HH)[q]  = 2*e[2q] - LL[q]
# so both outputs are row @ K with K of shape (2W, W/2), 4 nonzeros/column.
# ---------------------------------------------------------------------------
@functools.lru_cache(maxsize=None)
def _haar_pair_operators(W: int, dtype_name: str = "float32"):
    W4 = W // 2
    kll = np.zeros((2 * W, W4), np.float32)
    khs = np.zeros((2 * W, W4), np.float32)
    for q in range(W4):
        kll[2 * q, q] = 0.5
        kll[2 * q + 1, q] = 0.5
        kll[W + 2 * q, q] = 0.5
        kll[W + 2 * q + 1, q] = 0.5
        khs[2 * q, q] = 1.5          # 2*x00 - 0.5*x00
        khs[2 * q + 1, q] = -0.5
        khs[W + 2 * q, q] = -0.5
        khs[W + 2 * q + 1, q] = -0.5
    return (jnp.asarray(kll, dtype=dtype_name),
            jnp.asarray(khs, dtype=dtype_name))


# ---------------------------------------------------------------------------
# Kernel: two small MXU dots, results written directly to the two output
# sub-refs (no lane-boundary slicing of a wide result).
# ---------------------------------------------------------------------------
def _dwt_pair_kernel(x_ref, kll_ref, khs_ref, out_ref):
    # x_ref  : (bt, mt, 2W)   row-pair rows, native input dtype
    # k*_ref : (2W, W/2)      constant operators (compute dtype)
    # out_ref: (bt, 2, mt, W/2)  dim 1: 0 -> LL, 1 -> LH+HL+HH
    bt, mt, w2 = x_ref.shape
    w4 = kll_ref.shape[1]
    x = x_ref[...].reshape(bt * mt, w2).astype(kll_ref.dtype)   # in-kernel cast
    ll = jnp.dot(x, kll_ref[...], preferred_element_type=jnp.float32)
    hs = jnp.dot(x, khs_ref[...], preferred_element_type=jnp.float32)
    out_ref[:, 0] = ll.reshape(bt, mt, w4).astype(out_ref.dtype)
    out_ref[:, 1] = hs.reshape(bt, mt, w4).astype(out_ref.dtype)


# ---------------------------------------------------------------------------
# Tiling helpers.
# ---------------------------------------------------------------------------
def _pick_row_tile(m_rows: int, target: int = 512) -> int:
    """Largest multiple-of-8 divisor of m_rows that is <= target (else full)."""
    if m_rows <= target:
        return m_rows
    for t in range(target, 7, -1):
        if m_rows % t == 0 and t % 8 == 0:
            return t
    return m_rows


def _pick_batch_tile(batch: int, m_rows: int, target_rows: int = 256) -> int:
    """Fold whole batches into one block when per-batch rows are few."""
    if batch <= 1 or m_rows >= target_rows or m_rows % 8 != 0:
        return 1
    want = min(batch, max(1, target_rows // m_rows))
    while batch % want != 0:
        want -= 1
    return want


def _vmem_limit_bytes(needed: int) -> int:
    """Generation-gated VMEM budget (v5e/v6e: 128 MiB, v7x: 64 MiB physical)."""
    try:
        cap = int(pltpu.get_tpu_info().vmem_capacity_bytes)
    except Exception:
        cap = 64 * 1024 * 1024            # conservative (v7x per-TC)
    return int(min(max(2 * needed, 16 * 1024 * 1024), (cap * 3) // 4))


# ---------------------------------------------------------------------------
# Wrapper: Downsamplewave forward, (B, C, H, W) -> (B, 2C, H//2, W//2).
# ---------------------------------------------------------------------------
def downsamplewave(x, *, compute_dtype=jnp.float32):
    B, C, H, W = x.shape
    assert H % 2 == 0 and W % 2 == 0, "haar DWT downsample needs even H, W"
    # TODO(synk): odd H/W (handled by the generic DWT_2D matrices) is not
    # supported; the reference module's channel concat requires even sizes.

    M = C * (H // 2)                       # matmul M rows per batch
    W2, W4 = 2 * W, W // 2
    kll, khs = _haar_pair_operators(W, np.dtype(compute_dtype).name)

    x3 = x.reshape(B, M, W2)               # free reshape, native dtype kept

    mt = _pick_row_tile(M)
    bt = _pick_batch_tile(B, M) if mt == M else 1
    grid = (B // bt, M // mt)

    out_dtype = jnp.float32
    x_bytes = bt * mt * W2 * x.dtype.itemsize
    o_bytes = bt * 2 * mt * W4 * np.dtype(out_dtype).itemsize
    k_bytes = 2 * W2 * W4 * np.dtype(compute_dtype).itemsize
    vmem_limit = _vmem_limit_bytes(2 * x_bytes + 2 * o_bytes + k_bytes)

    cost = pl.CostEstimate(
        flops=4 * B * M * W2 * W4,          # two (B*M, 2W)@(2W, W/2) dots
        transcendentals=0,
        bytes_accessed=(B * M * W2 * x.dtype.itemsize
                        + B * 2 * M * W4 * np.dtype(out_dtype).itemsize
                        + k_bytes),
    )

    def build(single_buffer_k: bool):
        k_kwargs = dict(pipeline_mode=pl.Buffered(1)) if single_buffer_k else {}
        k_spec = pl.BlockSpec((W2, W4), lambda b, m: (0, 0), **k_kwargs)
        return pl.pallas_call(
            _dwt_pair_kernel,
            out_shape=jax.ShapeDtypeStruct((B, 2, M, W4), out_dtype),
            grid=grid,
            in_specs=[pl.BlockSpec((bt, mt, W2), lambda b, m: (b, m, 0)),
                      k_spec, k_spec],
            out_specs=pl.BlockSpec((bt, 2, mt, W4), lambda b, m: (b, 0, m, 0)),
            compiler_params=pltpu.CompilerParams(
                dimension_semantics=("parallel", "parallel"),
                vmem_limit_bytes=vmem_limit,
            ),
            cost_estimate=cost,
        )

    try:
        out = build(True)(x3, kll, khs)
    except Exception:
        # Fallback if this Pallas build rejects single-buffered constant inputs.
        out = build(False)(x3, kll, khs)

    # (B, 2, C*(H/2), W/2) is layout-identical to torch.cat([LL, LH+HL+HH], 1)
    # flattened, so these reshapes are free.
    return out.reshape(B, 2 * C, H // 2, W // 2)


# ---------------------------------------------------------------------------
# Independent float64 numpy reference mirroring the PyTorch forward exactly
# (DWT_2D('haar') matrices for even H, W).
# ---------------------------------------------------------------------------
def _ref_downsamplewave(x):
    x = np.asarray(x, np.float64)
    B, C, H, W = x.shape
    r = 1.0 / math.sqrt(2.0)
    ml0 = np.zeros((H // 2, H)); mh0 = np.zeros((H // 2, H))
    for i in range(H // 2):
        ml0[i, 2 * i] = r; ml0[i, 2 * i + 1] = r
        mh0[i, 2 * i] = r; mh0[i, 2 * i + 1] = -r
    ml1 = np.zeros((W, W // 2)); mh1 = np.zeros((W, W // 2))
    for j in range(W // 2):
        ml1[2 * j, j] = r; ml1[2 * j + 1, j] = r
        mh1[2 * j, j] = r; mh1[2 * j + 1, j] = -r
    L = np.einsum('ij,bcjk->bcik', ml0, x)
    Hh = np.einsum('ij,bcjk->bcik', mh0, x)
    LL = L @ ml1
    LH = L @ mh1
    HL = Hh @ ml1
    HH = Hh @ mh1
    return np.concatenate([LL, LH + HL + HH], axis=1)


# ---------------------------------------------------------------------------
if __name__ == "__main__":
    key = jax.random.PRNGKey(0)
    k1, k2 = jax.random.split(key)

    # Small shape: exercises the batch-folded path (M = C*H/2 = 64 rows).
    x_small = jax.random.normal(k1, (2, 8, 16, 16), jnp.float32)
    out_small = jax.block_until_ready(downsamplewave(x_small))
    assert out_small.shape == (2, 16, 8, 8) and out_small.dtype == jnp.float32
    np.testing.assert_allclose(np.asarray(out_small),
                               _ref_downsamplewave(np.asarray(x_small)),
                               rtol=1e-4, atol=1e-4)

    # Larger spatial extent: single-batch blocks, M = 512 rows.
    x_big = jax.random.normal(k2, (2, 16, 64, 64), jnp.float32)
    out_big = jax.block_until_ready(downsamplewave(x_big))
    assert out_big.shape == (2, 32, 32, 32)
    np.testing.assert_allclose(np.asarray(out_big),
                               _ref_downsamplewave(np.asarray(x_big)),
                               rtol=1e-4, atol=1e-4)

    # Native-dtype input path: bf16 input, cast happens inside the kernel.
    x_bf16 = x_small.astype(jnp.bfloat16)
    out_bf16 = jax.block_until_ready(downsamplewave(x_bf16))
    np.testing.assert_allclose(
        np.asarray(out_bf16),
        _ref_downsamplewave(np.asarray(x_bf16.astype(jnp.float32))),
        rtol=1e-4, atol=1e-4)

    print("KERNEL_OK")
</pallas_src>

<mosaic_0001>
module attributes {stable_mosaic.version = 11 : i64} {
  func.func @_dwt_pair_kernel(%arg0: i32, %arg1: i32, %arg2: memref<2x64x32xf32, #tpu.memory_space<vmem>>, %arg3: memref<32x8xf32, #tpu.memory_space<vmem>>, %arg4: memref<32x8xf32, #tpu.memory_space<vmem>>, %arg5: memref<2x2x64x8xf32, #tpu.memory_space<vmem>>) attributes {dimension_semantics = [#tpu.dimension_semantics<parallel>, #tpu.dimension_semantics<parallel>], iteration_bounds = array<i64: 1, 1>, scalar_prefetch = 0 : i64, scratch_operands = 0 : i64, tpu.core_type = #tpu.core_type<tc>, window_params = [{transform_indices = @transform_0, window_bounds = array<i64: 2, 64, 32>}, {pipeline_mode = #tpu.pipeline_mode<synchronous>, transform_indices = @transform_1, window_bounds = array<i64: 32, 8>}, {pipeline_mode = #tpu.pipeline_mode<synchronous>, transform_indices = @transform_2, window_bounds = array<i64: 32, 8>}, {transform_indices = @transform_3, window_bounds = array<i64: 2, 2, 64, 8>}]} {
    %c0 = arith.constant 0 : index
    %c0_0 = arith.constant 0 : index
    %c0_1 = arith.constant 0 : index
    %0 = vector.load %arg2[%c0, %c0_0, %c0_1] : memref<2x64x32xf32, #tpu.memory_space<vmem>>, vector<2x64x32xf32>
    %1 = vector.shape_cast %0 : vector<2x64x32xf32> to vector<128x32xf32>
    %c0_2 = arith.constant 0 : index
    %c0_3 = arith.constant 0 : index
    %2 = vector.load %arg3[%c0_2, %c0_3] : memref<32x8xf32, #tpu.memory_space<vmem>>, vector<32x8xf32>
    %cst = arith.constant dense<0.000000e+00> : vector<128x8xf32>
    %3 = tpu.matmul %1, %2, %cst {dimension_numbers = #tpu.dot_dimension_numbers<[1], [0], [0], [1], [0, 0, 1, 1], [], []>} : vector<128x32xf32>, vector<32x8xf32>, vector<128x8xf32> -> vector<128x8xf32>
    %c0_4 = arith.constant 0 : index
    %c0_5 = arith.constant 0 : index
    %4 = vector.load %arg4[%c0_4, %c0_5] : memref<32x8xf32, #tpu.memory_space<vmem>>, vector<32x8xf32>
    %cst_6 = arith.constant dense<0.000000e+00> : vector<128x8xf32>
    %5 = tpu.matmul %1, %4, %cst_6 {dimension_numbers = #tpu.dot_dimension_numbers<[1], [0], [0], [1], [0, 0, 1, 1], [], []>} : vector<128x32xf32>, vector<32x8xf32>, vector<128x8xf32> -> vector<128x8xf32>
    %6 = vector.shape_cast %3 : vector<128x8xf32> to vector<2x64x8xf32>
    %c0_7 = arith.constant 0 : index
    %c0_8 = arith.constant 0 : index
    %c0_9 = arith.constant 0 : index
    %c0_10 = arith.constant 0 : index
    %7 = vector.load %arg5[%c0_7, %c0_8, %c0_9, %c0_10] : memref<2x2x64x8xf32, #tpu.memory_space<vmem>>, vector<2x1x64x8xf32>
    %8 = vector.shape_cast %7 : vector<2x1x64x8xf32> to vector<2x64x8xf32>
    %9 = vector.shape_cast %6 : vector<2x64x8xf32> to vector<2x1x64x8xf32>
    tpu.vector_store %arg5[%c0_7, %c0_8, %c0_9, %c0_10], %9 {strides = array<i32>} : memref<2x2x64x8xf32, #tpu.memory_space<vmem>>, vector<2x1x64x8xf32>,
    %10 = vector.shape_cast %5 : vector<128x8xf32> to vector<2x64x8xf32>
    %c0_11 = arith.constant 0 : index
    %c1 = arith.constant 1 : index
    %c0_12 = arith.constant 0 : index
    %c0_13 = arith.constant 0 : index
    %11 = vector.load %arg5[%c0_11, %c1, %c0_12, %c0_13] : memref<2x2x64x8xf32, #tpu.memory_space<vmem>>, vector<2x1x64x8xf32>
    %12 = vector.shape_cast %11 : vector<2x1x64x8xf32> to vector<2x64x8xf32>
    %13 = vector.shape_cast %10 : vector<2x64x8xf32> to vector<2x1x64x8xf32>
    tpu.vector_store %arg5[%c0_11, %c1, %c0_12, %c0_13], %13 {strides = array<i32>} : memref<2x2x64x8xf32, #tpu.memory_space<vmem>>, vector<2x1x64x8xf32>,
    return
  }
  func.func @transform_0(%arg0: i32, %arg1: i32) -> (i32, i32, i32) {
    %c0_i32 = arith.constant 0 : i32
    %c0_i32_0 = arith.constant 0 : i32
    return %arg0, %arg1, %c0_i32 : i32, i32, i32
  }
  func.func @transform_1(%arg0: i32, %arg1: i32) -> (i32, i32) {
    %c0_i32 = arith.constant 0 : i32
    %c0_i32_0 = arith.constant 0 : i32
    %c0_i32_1 = arith.constant 0 : i32
    return %c0_i32, %c0_i32_0 : i32, i32
  }
  func.func @transform_2(%arg0: i32, %arg1: i32) -> (i32, i32) {
    %c0_i32 = arith.constant 0 : i32
    %c0_i32_0 = arith.constant 0 : i32
    %c0_i32_1 = arith.constant 0 : i32
    return %c0_i32, %c0_i32_0 : i32, i32
  }
  func.func @transform_3(%arg0: i32, %arg1: i32) -> (i32, i32, i32, i32) {
    %c0_i32 = arith.constant 0 : i32
    %c0_i32_0 = arith.constant 0 : i32
    %c0_i32_1 = arith.constant 0 : i32
    return %arg0, %c0_i32, %arg1, %c0_i32_0 : i32, i32, i32, i32
  }
}

module attributes {stable_mosaic.version = 11 : i64} {
  func.func @_dwt_pair_kernel(%arg0: i32, %arg1: i32, %arg2: memref<2x64x32xf32, #tpu.memory_space<vmem>>, %arg3: memref<32x8xf32, #tpu.memory_space<vmem>>, %arg4: memref<32x8xf32, #tpu.memory_space<vmem>>, %arg5: memref<2x2x64x8xf32, #tpu.memory_space<vmem>>) attributes {dimension_semantics = [#tpu.dimension_semantics<parallel>, #tpu.dimension_semantics<parallel>], iteration_bounds = array<i64: 1, 1>, scalar_prefetch = 0 : i64, scratch_operands = 0 : i64, tpu.core_type = #tpu.core_type<tc>, window_params = [{transform_indices = @transform_0, window_bounds = array<i64: 2, 64, 32>}, {pipeline_mode = #tpu.pipeline_mode<synchronous>, transform_indices = @transform_1, window_bounds = array<i64: 32, 8>}, {pipeline_mode = #tpu.pipeline_mode<synchronous>, transform_indices = @transform_2, window_bounds = array<i64: 32, 8>}, {transform_indices = @transform_3, window_bounds = array<i64: 2, 2, 64, 8>}]} {
    %c0 = arith.constant 0 : index
    %c0_0 = arith.constant 0 : index
    %c0_1 = arith.constant 0 : index
    %0 = vector.load %arg2[%c0, %c0_0, %c0_1] : memref<2x64x32xf32, #tpu.memory_space<vmem>>, vector<2x64x32xf32>
    %1 = vector.shape_cast %0 : vector<2x64x32xf32> to vector<128x32xf32>
    %c0_2 = arith.constant 0 : index
    %c0_3 = arith.constant 0 : index
    %2 = vector.load %arg3[%c0_2, %c0_3] : memref<32x8xf32, #tpu.memory_space<vmem>>, vector<32x8xf32>
    %cst = arith.constant dense<0.000000e+00> : vector<128x8xf32>
    %3 = tpu.matmul %1, %2, %cst {dimension_numbers = #tpu.dot_dimension_numbers<[1], [0], [0], [1], [0, 0, 1, 1], [], []>} : vector<128x32xf32>, vector<32x8xf32>, vector<128x8xf32> -> vector<128x8xf32>
    %c0_4 = arith.constant 0 : index
    %c0_5 = arith.constant 0 : index
    %4 = vector.load %arg4[%c0_4, %c0_5] : memref<32x8xf32, #tpu.memory_space<vmem>>, vector<32x8xf32>
    %cst_6 = arith.constant dense<0.000000e+00> : vector<128x8xf32>
    %5 = tpu.matmul %1, %4, %cst_6 {dimension_numbers = #tpu.dot_dimension_numbers<[1], [0], [0], [1], [0, 0, 1, 1], [], []>} : vector<128x32xf32>, vector<32x8xf32>, vector<128x8xf32> -> vector<128x8xf32>
    %6 = vector.shape_cast %3 : vector<128x8xf32> to vector<2x64x8xf32>
    %c0_7 = arith.constant 0 : index
    %c0_8 = arith.constant 0 : index
    %c0_9 = arith.constant 0 : index
    %c0_10 = arith.constant 0 : index
    %7 = vector.load %arg5[%c0_7, %c0_8, %c0_9, %c0_10] : memref<2x2x64x8xf32, #tpu.memory_space<vmem>>, vector<2x1x64x8xf32>
    %8 = vector.shape_cast %7 : vector<2x1x64x8xf32> to vector<2x64x8xf32>
    %9 = vector.shape_cast %6 : vector<2x64x8xf32> to vector<2x1x64x8xf32>
    tpu.vector_store %arg5[%c0_7, %c0_8, %c0_9, %c0_10], %9 {strides = array<i32>} : memref<2x2x64x8xf32, #tpu.memory_space<vmem>>, vector<2x1x64x8xf32>,
    %10 = vector.shape_cast %5 : vector<128x8xf32> to vector<2x64x8xf32>
    %c0_11 = arith.constant 0 : index
    %c1 = arith.constant 1 : index
    %c0_12 = arith.constant 0 : index
    %c0_13 = arith.constant 0 : index
    %11 = vector.load %arg5[%c0_11, %c1, %c0_12, %c0_13] : memref<2x2x64x8xf32, #tpu.memory_space<vmem>>, vector<2x1x64x8xf32>
    %12 = vector.shape_cast %11 : vector<2x1x64x8xf32> to vector<2x64x8xf32>
    %13 = vector.shape_cast %10 : vector<2x64x8xf32> to vector<2x1x64x8xf32>
    tpu.vector_store %arg5[%c0_11, %c1, %c0_12, %c0_13], %13 {strides = array<i32>} : memref<2x2x64x8xf32, #tpu.memory_space<vmem>>, vector<2x1x64x8xf32>,
    return
  }
  func.func @transform_0(%arg0: i32, %arg1: i32) -> (i32, i32, i32) {
    %c0_i32 = arith.constant 0 : i32
    %c0_i32_0 = arith.constant 0 : i32
    return %arg0, %arg1, %c0_i32 : i32, i32, i32
  }
  func.func @transform_1(%arg0: i32, %arg1: i32) -> (i32, i32) {
    %c0_i32 = arith.constant 0 : i32
    %c0_i32_0 = arith.constant 0 : i32
    %c0_i32_1 = arith.constant 0 : i32
    return %c0_i32, %c0_i32_0 : i32, i32
  }
  func.func @transform_2(%arg0: i32, %arg1: i32) -> (i32, i32) {
    %c0_i32 = arith.constant 0 : i32
    %c0_i32_0 = arith.constant 0 : i32
    %c0_i32_1 = arith.constant 0 : i32
    return %c0_i32, %c0_i32_0 : i32, i32
  }
  func.func @transform_3(%arg0: i32, %arg1: i32) -> (i32, i32, i32, i32) {
    %c0_i32 = arith.constant 0 : i32
    %c0_i32_0 = arith.constant 0 : i32
    %c0_i32_1 = arith.constant 0 : i32
    return %arg0, %c0_i32, %arg1, %c0_i32_0 : i32, i32, i32, i32
  }
}

</mosaic_0001>

<bundles_post_ra>
// kernel: tpu_custom_call.1
= control target key start
LH: loop header
LB: loop body
LE: loop exit
PB: predicated region body
PF: predicated region fallthrough
CT: control target
= control target key end

     0   :  { %vm34_vm0 = vcmask 261120   ;;  %vm377_vm1 = vcmask 64512   ;;  %s835_s1 = inlined_call_operand.vmem [shape: f32[32,8], index: 1, kind: input, shape index: {}]   ;;  %s836_s2 = inlined_call_operand.vmem [shape: f32[32,8], index: 2, kind: input, shape index: {}]   ;;  %s837_s0 = inlined_call_operand.vmem [shape: f32[2,64,32], index: 0, kind: input, shape index: {}]   ;;  %s838_s3 = inlined_call_operand.vmem [shape: f32[2,2,64,8], index: 3, kind: output, shape index: {}]  }
   0x1   :  { %v30_v0 = vld [vmem:[%s835_s1] sm:$0xff]  ;;  %v31_v1 = vld [vmem:[%s835_s1 + $0x8] sm:$0xff]  ;;  %v32_v5 = vld [vmem:[%s835_s1 + $0x10] sm:$0xff] }
   0x2   :  { %v228_v2 = vld [vmem:[%s836_s2] sm:$0xff]  ;;  %v567_v3 = vpack.c.bf16 %v31_v1, %v30_v0  ;;  %v229_v4 = vld [vmem:[%s836_s2 + $0x8] sm:$0xff]  ;;  %v33_v6 = vld [vmem:[%s835_s1 + $0x18] sm:$0xff] }
   0x3   :  { %v575_v7 = vpack.c.bf16 %v229_v4, %v228_v2  ;;  %v571_v8 = vpack.c.bf16 %v33_v6, %v32_v5  ;;  %v230_v9 = vld [vmem:[%s836_s2 + $0x10] sm:$0xff]  ;;  %v231_v10 = vld [vmem:[%s836_s2 + $0x18] sm:$0xff]  ;;  %v14_v11 = vld [vmem:[%s837_s0] sm:$0xff] }
   0x4   :  { %568 = vmatprep.subr.bf16.mxu0 %v567_v3  ;;  %v579_v12 = vpack.c.bf16 %v231_v10, %v230_v9  ;;  %511 = vmatprep.mubr.msk.f32.mxu0 %vm34_vm0, %v14_v11  ;;  %v15_v13 = vld [vmem:[%s837_s0 + $0x8] sm:$0xff]  ;;  %v16_v14 = vld [vmem:[%s837_s0 + $0x10] sm:$0xff]  ;;  %v17_v15 = vld [vmem:[%s837_s0 + $0x18] sm:$0xff] }
   0x5   :  { %576 = vmatprep.subr.bf16.mxu1 %v575_v7  ;;  %570 = vmatpush3.bf16.msra.mxu0 %v567_v3  ;;  %v18_v16 = vld [vmem:[%s837_s0 + $0x20] sm:$0xff]  ;;  %v19_v17 = vld [vmem:[%s837_s0 + $0x28] sm:$0xff]  ;;  %v20_v18 = vld [vmem:[%s837_s0 + $0x30] sm:$0xff] }
   0x6   :  { %578 = vmatpush3.bf16.msra.mxu1 %v575_v7  ;;  %572 = vmatprep.subr.bf16.mxu0 %v571_v8  ;;  %v21_v19 = vld [vmem:[%s837_s0 + $0x38] sm:$0xff]  ;;  %v22_v20 = vld [vmem:[%s837_s0 + $0x40] sm:$0xff]  ;;  %v23_v21 = vld [vmem:[%s837_s0 + $0x48] sm:$0xff] }
   0x7   :  { %580 = vmatprep.subr.bf16.mxu1 %v579_v12  ;;  %543 = vmatprep.mubr.msk.f32.mxu1 %vm34_vm0, %v14_v11  ;;  %v24_v22 = vld [vmem:[%s837_s0 + $0x50] sm:$0xff]  ;;  %v25_v23 = vld [vmem:[%s837_s0 + $0x58] sm:$0xff]  ;;  %v26_v24 = vld [vmem:[%s837_s0 + $0x60] sm:$0xff] }
   0x8   :  { %v27_v25 = vld [vmem:[%s837_s0 + $0x68] sm:$0xff]  ;;  %v28_v26 = vld [vmem:[%s837_s0 + $0x70] sm:$0xff]  ;;  %v29_v27 = vld [vmem:[%s837_s0 + $0x78] sm:$0xff] }
   0x9   :  { %574 = vmatpush3.bf16.msra.mxu0 %v571_v8 }
   0xa   :  { %582 = vmatpush3.bf16.msra.mxu1 %v579_v12 }
   0xc   :  { %512 = vmatmul.mubr.msk.f32.vlgmr.msra.gmra.mrb[0].mxu0 %vm34_vm0, %v15_v13 }
   0xd   :  { %544 = vmatmul.mubr.msk.f32.vlgmr.msra.gmra.mrb[0].mxu1 %vm34_vm0, %v15_v13  ;;  %514 = vmatprep.mubr.msk.f32.mxu0 %vm34_vm0, %v16_v14 }
   0xe   :  { %546 = vmatprep.mubr.msk.f32.mxu1 %vm34_vm0, %v16_v14 }
  0x10   :  { %515 = vmatmul.mubr.msk.f32.gmra.mrb[2].mxu0 %vm34_vm0, %v17_v15 }
  0x11   :  { %547 = vmatmul.mubr.msk.f32.gmra.mrb[2].mxu1 %vm34_vm0, %v17_v15  ;;  %517 = vmatprep.mubr.msk.f32.mxu0 %vm34_vm0, %v18_v16 }
  0x12   :  { %549 = vmatprep.mubr.msk.f32.mxu1 %vm34_vm0, %v18_v16 }
  0x14   :  { %518 = vmatmul.mubr.msk.f32.gmra.mrb[4].mxu0 %vm34_vm0, %v19_v17 }
  0x15   :  { %550 = vmatmul.mubr.msk.f32.gmra.mrb[4].mxu1 %vm34_vm0, %v19_v17  ;;  %520 = vmatprep.mubr.msk.f32.mxu0 %vm34_vm0, %v20_v18 }
  0x16   :  { %552 = vmatprep.mubr.msk.f32.mxu1 %vm34_vm0, %v20_v18 }
  0x18   :  { %521 = vmatmul.mubr.msk.f32.gmra.mrb[6].mxu0 %vm34_vm0, %v21_v19 }
  0x19   :  { %553 = vmatmul.mubr.msk.f32.gmra.mrb[6].mxu1 %vm34_vm0, %v21_v19  ;;  %523 = vmatprep.mubr.msk.f32.mxu0 %vm34_vm0, %v22_v20 }
  0x1a   :  { %555 = vmatprep.mubr.msk.f32.mxu1 %vm34_vm0, %v22_v20 }
  0x1c   :  { %524 = vmatmul.mubr.msk.f32.gmra.mrb[8].mxu0 %vm34_vm0, %v23_v21 }
  0x1d   :  { %556 = vmatmul.mubr.msk.f32.gmra.mrb[8].mxu1 %vm34_vm0, %v23_v21  ;;  %526 = vmatprep.mubr.msk.f32.mxu0 %vm34_vm0, %v24_v22 }
  0x1e   :  { %558 = vmatprep.mubr.msk.f32.mxu1 %vm34_vm0, %v24_v22 }
  0x20   :  { %527 = vmatmul.mubr.msk.f32.gmra.mrb[10].mxu0 %vm34_vm0, %v25_v23 }
  0x21   :  { %559 = vmatmul.mubr.msk.f32.gmra.mrb[10].mxu1 %vm34_vm0, %v25_v23  ;;  %529 = vmatprep.mubr.msk.f32.mxu0 %vm34_vm0, %v26_v24 }
  0x22   :  { %561 = vmatprep.mubr.msk.f32.mxu1 %vm34_vm0, %v26_v24 }
  0x24   :  { %530 = vmatmul.mubr.msk.f32.gmra.mrb[12].mxu0 %vm34_vm0, %v27_v25 }
  0x25   :  { %562 = vmatmul.mubr.msk.f32.gmra.mrb[12].mxu1 %vm34_vm0, %v27_v25  ;;  %532 = vmatprep.mubr.msk.f32.mxu0 %vm34_vm0, %v28_v26 }
  0x26   :  { %564 = vmatprep.mubr.msk.f32.mxu1 %vm34_vm0, %v28_v26 }
  0x28   :  { %533 = vmatmul.mubr.msk.f32.gmra.mrb[14].mxu0 %vm34_vm0, %v29_v27 }
  0x29   :  { %565 = vmatmul.mubr.msk.f32.gmra.mrb[14].mxu1 %vm34_vm0, %v29_v27 }
  0xdf   :  { %v513_v28 = vpop.f32.mrb[0].mxu0 }
  0xe0   :  { %379 = vst.msk [vmem:[%s838_s3 + $0x8] sm:$0xff] %vm377_vm1, %v513_v28  ;;  %v545_v29 = vpop.f32.mrb[0].mxu1  ;;  %v149_v30 = vpop.f32.mrb[1].mxu0 }
  0xe1   :  { %448 = vst.msk [vmem:[%s838_s3 + $0x48] sm:$0xff] %vm377_vm1, %v545_v29  ;;  %378 = vst.msk [vmem:[%s838_s3] sm:$0xff] %vm377_vm1, %v149_v30  ;;  %v298_v31 = vpop.f32.mrb[1].mxu1 }
  0xe2   :  { %447 = vst.msk [vmem:[%s838_s3 + $0x40] sm:$0xff] %vm377_vm1, %v298_v31 }
  0xe3   :  { %v516_v32 = vpop.f32.mrb[2].mxu0 }
  0xe4   :  { %381 = vst.msk [vmem:[%s838_s3 + $0x18] sm:$0xff] %vm377_vm1, %v516_v32  ;;  %v548_v33 = vpop.f32.mrb[2].mxu1  ;;  %v159_v34 = vpop.f32.mrb[3].mxu0 }
  0xe5   :  { %450 = vst.msk [vmem:[%s838_s3 + $0x58] sm:$0xff] %vm377_vm1, %v548_v33  ;;  %380 = vst.msk [vmem:[%s838_s3 + $0x10] sm:$0xff] %vm377_vm1, %v159_v34  ;;  %v308_v35 = vpop.f32.mrb[3].mxu1 }
  0xe6   :  { %449 = vst.msk [vmem:[%s838_s3 + $0x50] sm:$0xff] %vm377_vm1, %v308_v35 }
  0xe7   :  { %v519_v36 = vpop.f32.mrb[4].mxu0 }
  0xe8   :  { %383 = vst.msk [vmem:[%s838_s3 + $0x28] sm:$0xff] %vm377_vm1, %v519_v36  ;;  %v551_v37 = vpop.f32.mrb[4].mxu1  ;;  %v169_v38 = vpop.f32.mrb[5].mxu0 }
  0xe9   :  { %452 = vst.msk [vmem:[%s838_s3 + $0x68] sm:$0xff] %vm377_vm1, %v551_v37  ;;  %382 = vst.msk [vmem:[%s838_s3 + $0x20] sm:$0xff] %vm377_vm1, %v169_v38  ;;  %v318_v39 = vpop.f32.mrb[5].mxu1 }
  0xea   :  { %451 = vst.msk [vmem:[%s838_s3 + $0x60] sm:$0xff] %vm377_vm1, %v318_v39 }
  0xeb   :  { %v522_v40 = vpop.f32.mrb[6].mxu0 }
  0xec   :  { %385 = vst.msk [vmem:[%s838_s3 + $0x38] sm:$0xff] %vm377_vm1, %v522_v40  ;;  %v554_v41 = vpop.f32.mrb[6].mxu1  ;;  %v179_v42 = vpop.f32.mrb[7].mxu0 }
  0xed   :  { %454 = vst.msk [vmem:[%s838_s3 + $0x78] sm:$0xff] %vm377_vm1, %v554_v41  ;;  %384 = vst.msk [vmem:[%s838_s3 + $0x30] sm:$0xff] %vm377_vm1, %v179_v42  ;;  %v328_v43 = vpop.f32.mrb[7].mxu1 }
  0xee   :  { %453 = vst.msk [vmem:[%s838_s3 + $0x70] sm:$0xff] %vm377_vm1, %v328_v43 }
  0xef   :  { %v525_v44 = vpop.f32.mrb[8].mxu0 }
  0xf0   :  { %387 = vst.msk [vmem:[%s838_s3 + $0x88] sm:$0xff] %vm377_vm1, %v525_v44  ;;  %v557_v45 = vpop.f32.mrb[8].mxu1  ;;  %v189_v46 = vpop.f32.mrb[9].mxu0 }
  0xf1   :  { %456 = vst.msk [vmem:[%s838_s3 + $0xc8] sm:$0xff] %vm377_vm1, %v557_v45  ;;  %386 = vst.msk [vmem:[%s838_s3 + $0x80] sm:$0xff] %vm377_vm1, %v189_v46  ;;  %v338_v47 = vpop.f32.mrb[9].mxu1 }
  0xf2   :  { %455 = vst.msk [vmem:[%s838_s3 + $0xc0] sm:$0xff] %vm377_vm1, %v338_v47 }
  0xf3   :  { %v528_v48 = vpop.f32.mrb[10].mxu0 }
  0xf4   :  { %389 = vst.msk [vmem:[%s838_s3 + $0x98] sm:$0xff] %vm377_vm1, %v528_v48  ;;  %v560_v49 = vpop.f32.mrb[10].mxu1  ;;  %v199_v50 = vpop.f32.mrb[11].mxu0 }
  0xf5   :  { %458 = vst.msk [vmem:[%s838_s3 + $0xd8] sm:$0xff] %vm377_vm1, %v560_v49  ;;  %388 = vst.msk [vmem:[%s838_s3 + $0x90] sm:$0xff] %vm377_vm1, %v199_v50  ;;  %v348_v51 = vpop.f32.mrb[11].mxu1 }
  0xf6   :  { %457 = vst.msk [vmem:[%s838_s3 + $0xd0] sm:$0xff] %vm377_vm1, %v348_v51 }
  0xf7   :  { %v531_v52 = vpop.f32.mrb[12].mxu0 }
  0xf8   :  { %391 = vst.msk [vmem:[%s838_s3 + $0xa8] sm:$0xff] %vm377_vm1, %v531_v52  ;;  %v563_v53 = vpop.f32.mrb[12].mxu1  ;;  %v209_v54 = vpop.f32.mrb[13].mxu0 }
  0xf9   :  { %460 = vst.msk [vmem:[%s838_s3 + $0xe8] sm:$0xff] %vm377_vm1, %v563_v53  ;;  %390 = vst.msk [vmem:[%s838_s3 + $0xa0] sm:$0xff] %vm377_vm1, %v209_v54  ;;  %v358_v55 = vpop.f32.mrb[13].mxu1 }
  0xfa   :  { %459 = vst.msk [vmem:[%s838_s3 + $0xe0] sm:$0xff] %vm377_vm1, %v358_v55 }
  0xfb   :  { %v534_v56 = vpop.f32.mrb[14].mxu0 }
  0xfc   :  { %393 = vst.msk [vmem:[%s838_s3 + $0xb8] sm:$0xff] %vm377_vm1, %v534_v56  ;;  %v566_v57 = vpop.f32.mrb[14].mxu1  ;;  %v219_v58 = vpop.f32.mrb[15].mxu0 }
  0xfd   :  { %462 = vst.msk [vmem:[%s838_s3 + $0xf8] sm:$0xff] %vm377_vm1, %v566_v57  ;;  %392 = vst.msk [vmem:[%s838_s3 + $0xb0] sm:$0xff] %vm377_vm1, %v219_v58  ;;  %v368_v59 = vpop.f32.mrb[15].mxu1 }
  0xfe   :  { %461 = vst.msk [vmem:[%s838_s3 + $0xf0] sm:$0xff] %vm377_vm1, %v368_v59 }

// kernel: tpu_custom_call.1
= control target key start
LH: loop header
LB: loop body
LE: loop exit
PB: predicated region body
PF: predicated region fallthrough
CT: control target
= control target key end

     0   :  { %vm34_vm0 = vcmask 261120   ;;  %vm377_vm1 = vcmask 64512   ;;  %s835_s1 = inlined_call_operand.vmem [shape: f32[32,8], index: 1, kind: input, shape index: {}]   ;;  %s836_s2 = inlined_call_operand.vmem [shape: f32[32,8], index: 2, kind: input, shape index: {}]   ;;  %s837_s0 = inlined_call_operand.vmem [shape: f32[2,64,32], index: 0, kind: input, shape index: {}]   ;;  %s838_s3 = inlined_call_operand.vmem [shape: f32[2,2,64,8], index: 3, kind: output, shape index: {}]  }
   0x1   :  { %v30_v0 = vld [vmem:[%s835_s1] sm:$0xff]  ;;  %v31_v1 = vld [vmem:[%s835_s1 + $0x8] sm:$0xff]  ;;  %v32_v5 = vld [vmem:[%s835_s1 + $0x10] sm:$0xff] }
   0x2   :  { %v228_v2 = vld [vmem:[%s836_s2] sm:$0xff]  ;;  %v567_v3 = vpack.c.bf16 %v31_v1, %v30_v0  ;;  %v229_v4 = vld [vmem:[%s836_s2 + $0x8] sm:$0xff]  ;;  %v33_v6 = vld [vmem:[%s835_s1 + $0x18] sm:$0xff] }
   0x3   :  { %v575_v7 = vpack.c.bf16 %v229_v4, %v228_v2  ;;  %v571_v8 = vpack.c.bf16 %v33_v6, %v32_v5  ;;  %v230_v9 = vld [vmem:[%s836_s2 + $0x10] sm:$0xff]  ;;  %v231_v10 = vld [vmem:[%s836_s2 + $0x18] sm:$0xff]  ;;  %v14_v11 = vld [vmem:[%s837_s0] sm:$0xff] }
   0x4   :  { %568 = vmatprep.subr.bf16.mxu0 %v567_v3  ;;  %v579_v12 = vpack.c.bf16 %v231_v10, %v230_v9  ;;  %511 = vmatprep.mubr.msk.f32.mxu0 %vm34_vm0, %v14_v11  ;;  %v15_v13 = vld [vmem:[%s837_s0 + $0x8] sm:$0xff]  ;;  %v16_v14 = vld [vmem:[%s837_s0 + $0x10] sm:$0xff]  ;;  %v17_v15 = vld [vmem:[%s837_s0 + $0x18] sm:$0xff] }
   0x5   :  { %576 = vmatprep.subr.bf16.mxu1 %v575_v7  ;;  %570 = vmatpush3.bf16.msra.mxu0 %v567_v3  ;;  %v18_v16 = vld [vmem:[%s837_s0 + $0x20] sm:$0xff]  ;;  %v19_v17 = vld [vmem:[%s837_s0 + $0x28] sm:$0xff]  ;;  %v20_v18 = vld [vmem:[%s837_s0 + $0x30] sm:$0xff] }
   0x6   :  { %578 = vmatpush3.bf16.msra.mxu1 %v575_v7  ;;  %572 = vmatprep.subr.bf16.mxu0 %v571_v8  ;;  %v21_v19 = vld [vmem:[%s837_s0 + $0x38] sm:$0xff]  ;;  %v22_v20 = vld [vmem:[%s837_s0 + $0x40] sm:$0xff]  ;;  %v23_v21 = vld [vmem:[%s837_s0 + $0x48] sm:$0xff] }
   0x7   :  { %580 = vmatprep.subr.bf16.mxu1 %v579_v12  ;;  %543 = vmatprep.mubr.msk.f32.mxu1 %vm34_vm0, %v14_v11  ;;  %v24_v22 = vld [vmem:[%s837_s0 + $0x50] sm:$0xff]  ;;  %v25_v23 = vld [vmem:[%s837_s0 + $0x58] sm:$0xff]  ;;  %v26_v24 = vld [vmem:[%s837_s0 + $0x60] sm:$0xff] }
   0x8   :  { %v27_v25 = vld [vmem:[%s837_s0 + $0x68] sm:$0xff]  ;;  %v28_v26 = vld [vmem:[%s837_s0 + $0x70] sm:$0xff]  ;;  %v29_v27 = vld [vmem:[%s837_s0 + $0x78] sm:$0xff] }
   0x9   :  { %574 = vmatpush3.bf16.msra.mxu0 %v571_v8 }
   0xa   :  { %582 = vmatpush3.bf16.msra.mxu1 %v579_v12 }
   0xc   :  { %512 = vmatmul.mubr.msk.f32.vlgmr.msra.gmra.mrb[0].mxu0 %vm34_vm0, %v15_v13 }
   0xd   :  { %544 = vmatmul.mubr.msk.f32.vlgmr.msra.gmra.mrb[0].mxu1 %vm34_vm0, %v15_v13  ;;  %514 = vmatprep.mubr.msk.f32.mxu0 %vm34_vm0, %v16_v14 }
   0xe   :  { %546 = vmatprep.mubr.msk.f32.mxu1 %vm34_vm0, %v16_v14 }
  0x10   :  { %515 = vmatmul.mubr.msk.f32.gmra.mrb[2].mxu0 %vm34_vm0, %v17_v15 }
  0x11   :  { %547 = vmatmul.mubr.msk.f32.gmra.mrb[2].mxu1 %vm34_vm0, %v17_v15  ;;  %517 = vmatprep.mubr.msk.f32.mxu0 %vm34_vm0, %v18_v16 }
  0x12   :  { %549 = vmatprep.mubr.msk.f32.mxu1 %vm34_vm0, %v18_v16 }
  0x14   :  { %518 = vmatmul.mubr.msk.f32.gmra.mrb[4].mxu0 %vm34_vm0, %v19_v17 }
  0x15   :  { %550 = vmatmul.mubr.msk.f32.gmra.mrb[4].mxu1 %vm34_vm0, %v19_v17  ;;  %520 = vmatprep.mubr.msk.f32.mxu0 %vm34_vm0, %v20_v18 }
  0x16   :  { %552 = vmatprep.mubr.msk.f32.mxu1 %vm34_vm0, %v20_v18 }
  0x18   :  { %521 = vmatmul.mubr.msk.f32.gmra.mrb[6].mxu0 %vm34_vm0, %v21_v19 }
  0x19   :  { %553 = vmatmul.mubr.msk.f32.gmra.mrb[6].mxu1 %vm34_vm0, %v21_v19  ;;  %523 = vmatprep.mubr.msk.f32.mxu0 %vm34_vm0, %v22_v20 }
  0x1a   :  { %555 = vmatprep.mubr.msk.f32.mxu1 %vm34_vm0, %v22_v20 }
  0x1c   :  { %524 = vmatmul.mubr.msk.f32.gmra.mrb[8].mxu0 %vm34_vm0, %v23_v21 }
  0x1d   :  { %556 = vmatmul.mubr.msk.f32.gmra.mrb[8].mxu1 %vm34_vm0, %v23_v21  ;;  %526 = vmatprep.mubr.msk.f32.mxu0 %vm34_vm0, %v24_v22 }
  0x1e   :  { %558 = vmatprep.mubr.msk.f32.mxu1 %vm34_vm0, %v24_v22 }
  0x20   :  { %527 = vmatmul.mubr.msk.f32.gmra.mrb[10].mxu0 %vm34_vm0, %v25_v23 }
  0x21   :  { %559 = vmatmul.mubr.msk.f32.gmra.mrb[10].mxu1 %vm34_vm0, %v25_v23  ;;  %529 = vmatprep.mubr.msk.f32.mxu0 %vm34_vm0, %v26_v24 }
  0x22   :  { %561 = vmatprep.mubr.msk.f32.mxu1 %vm34_vm0, %v26_v24 }
  0x24   :  { %530 = vmatmul.mubr.msk.f32.gmra.mrb[12].mxu0 %vm34_vm0, %v27_v25 }
  0x25   :  { %562 = vmatmul.mubr.msk.f32.gmra.mrb[12].mxu1 %vm34_vm0, %v27_v25  ;;  %532 = vmatprep.mubr.msk.f32.mxu0 %vm34_vm0, %v28_v26 }
  0x26   :  { %564 = vmatprep.mubr.msk.f32.mxu1 %vm34_vm0, %v28_v26 }
  0x28   :  { %533 = vmatmul.mubr.msk.f32.gmra.mrb[14].mxu0 %vm34_vm0, %v29_v27 }
  0x29   :  { %565 = vmatmul.mubr.msk.f32.gmra.mrb[14].mxu1 %vm34_vm0, %v29_v27 }
  0xdf   :  { %v513_v28 = vpop.f32.mrb[0].mxu0 }
  0xe0   :  { %379 = vst.msk [vmem:[%s838_s3 + $0x8] sm:$0xff] %vm377_vm1, %v513_v28  ;;  %v545_v29 = vpop.f32.mrb[0].mxu1  ;;  %v149_v30 = vpop.f32.mrb[1].mxu0 }
  0xe1   :  { %448 = vst.msk [vmem:[%s838_s3 + $0x48] sm:$0xff] %vm377_vm1, %v545_v29  ;;  %378 = vst.msk [vmem:[%s838_s3] sm:$0xff] %vm377_vm1, %v149_v30  ;;  %v298_v31 = vpop.f32.mrb[1].mxu1 }
  0xe2   :  { %447 = vst.msk [vmem:[%s838_s3 + $0x40] sm:$0xff] %vm377_vm1, %v298_v31 }
  0xe3   :  { %v516_v32 = vpop.f32.mrb[2].mxu0 }
  0xe4   :  { %381 = vst.msk [vmem:[%s838_s3 + $0x18] sm:$0xff] %vm377_vm1, %v516_v32  ;;  %v548_v33 = vpop.f32.mrb[2].mxu1  ;;  %v159_v34 = vpop.f32.mrb[3].mxu0 }
  0xe5   :  { %450 = vst.msk [vmem:[%s838_s3 + $0x58] sm:$0xff] %vm377_vm1, %v548_v33  ;;  %380 = vst.msk [vmem:[%s838_s3 + $0x10] sm:$0xff] %vm377_vm1, %v159_v34  ;;  %v308_v35 = vpop.f32.mrb[3].mxu1 }
  0xe6   :  { %449 = vst.msk [vmem:[%s838_s3 + $0x50] sm:$0xff] %vm377_vm1, %v308_v35 }
  0xe7   :  { %v519_v36 = vpop.f32.mrb[4].mxu0 }
  0xe8   :  { %383 = vst.msk [vmem:[%s838_s3 + $0x28] sm:$0xff] %vm377_vm1, %v519_v36  ;;  %v551_v37 = vpop.f32.mrb[4].mxu1  ;;  %v169_v38 = vpop.f32.mrb[5].mxu0 }
  0xe9   :  { %452 = vst.msk [vmem:[%s838_s3 + $0x68] sm:$0xff] %vm377_vm1, %v551_v37  ;;  %382 = vst.msk [vmem:[%s838_s3 + $0x20] sm:$0xff] %vm377_vm1, %v169_v38  ;;  %v318_v39 = vpop.f32.mrb[5].mxu1 }
  0xea   :  { %451 = vst.msk [vmem:[%s838_s3 + $0x60] sm:$0xff] %vm377_vm1, %v318_v39 }
  0xeb   :  { %v522_v40 = vpop.f32.mrb[6].mxu0 }
  0xec   :  { %385 = vst.msk [vmem:[%s838_s3 + $0x38] sm:$0xff] %vm377_vm1, %v522_v40  ;;  %v554_v41 = vpop.f32.mrb[6].mxu1  ;;  %v179_v42 = vpop.f32.mrb[7].mxu0 }
  0xed   :  { %454 = vst.msk [vmem:[%s838_s3 + $0x78] sm:$0xff] %vm377_vm1, %v554_v41  ;;  %384 = vst.msk [vmem:[%s838_s3 + $0x30] sm:$0xff] %vm377_vm1, %v179_v42  ;;  %v328_v43 = vpop.f32.mrb[7].mxu1 }
  0xee   :  { %453 = vst.msk [vmem:[%s838_s3 + $0x70] sm:$0xff] %vm377_vm1, %v328_v43 }
  0xef   :  { %v525_v44 = vpop.f32.mrb[8].mxu0 }
  0xf0   :  { %387 = vst.msk [vmem:[%s838_s3 + $0x88] sm:$0xff] %vm377_vm1, %v525_v44  ;;  %v557_v45 = vpop.f32.mrb[8].mxu1  ;;  %v189_v46 = vpop.f32.mrb[9].mxu0 }
  0xf1   :  { %456 = vst.msk [vmem:[%s838_s3 + $0xc8] sm:$0xff] %vm377_vm1, %v557_v45  ;;  %386 = vst.msk [vmem:[%s838_s3 + $0x80] sm:$0xff] %vm377_vm1, %v189_v46  ;;  %v338_v47 = vpop.f32.mrb[9].mxu1 }
  0xf2   :  { %455 = vst.msk [vmem:[%s838_s3 + $0xc0] sm:$0xff] %vm377_vm1, %v338_v47 }
  0xf3   :  { %v528_v48 = vpop.f32.mrb[10].mxu0 }
  0xf4   :  { %389 = vst.msk [vmem:[%s838_s3 + $0x98] sm:$0xff] %vm377_vm1, %v528_v48  ;;  %v560_v49 = vpop.f32.mrb[10].mxu1  ;;  %v199_v50 = vpop.f32.mrb[11].mxu0 }
  0xf5   :  { %458 = vst.msk [vmem:[%s838_s3 + $0xd8] sm:$0xff] %vm377_vm1, %v560_v49  ;;  %388 = vst.msk [vmem:[%s838_s3 + $0x90] sm:$0xff] %vm377_vm1, %v199_v50  ;;  %v348_v51 = vpop.f32.mrb[11].mxu1 }
  0xf6   :  { %457 = vst.msk [vmem:[%s838_s3 + $0xd0] sm:$0xff] %vm377_vm1, %v348_v51 }
  0xf7   :  { %v531_v52 = vpop.f32.mrb[12].mxu0 }
  0xf8   :  { %391 = vst.msk [vmem:[%s838_s3 + $0xa8] sm:$0xff] %vm377_vm1, %v531_v52  ;;  %v563_v53 = vpop.f32.mrb[12].mxu1  ;;  %v209_v54 = vpop.f32.mrb[13].mxu0 }
  0xf9   :  { %460 = vst.msk [vmem:[%s838_s3 + $0xe8] sm:$0xff] %vm377_vm1, %v563_v53  ;;  %390 = vst.msk [vmem:[%s838_s3 + $0xa0] sm:$0xff] %vm377_vm1, %v209_v54  ;;  %v358_v55 = vpop.f32.mrb[13].mxu1 }
  0xfa   :  { %459 = vst.msk [vmem:[%s838_s3 + $0xe0] sm:$0xff] %vm377_vm1, %v358_v55 }
  0xfb   :  { %v534_v56 = vpop.f32.mrb[14].mxu0 }
  0xfc   :  { %393 = vst.msk [vmem:[%s838_s3 + $0xb8] sm:$0xff] %vm377_vm1, %v534_v56  ;;  %v566_v57 = vpop.f32.mrb[14].mxu1  ;;  %v219_v58 = vpop.f32.mrb[15].mxu0 }
  0xfd   :  { %462 = vst.msk [vmem:[%s838_s3 + $0xf8] sm:$0xff] %vm377_vm1, %v566_v57  ;;  %392 = vst.msk [vmem:[%s838_s3 + $0xb0] sm:$0xff] %vm377_vm1, %v219_v58  ;;  %v368_v59 = vpop.f32.mrb[15].mxu1 }
  0xfe   :  { %461 = vst.msk [vmem:[%s838_s3 + $0xf0] sm:$0xff] %vm377_vm1, %v368_v59 }

</bundles_post_ra>
